<compile_context>
chip_gen: v6e
topology: v6e:2x2x1
jax: 0.10.0
libtpu: 0.0.40
codegen_flags: <defaults>
</compile_context>

<pallas_src>
import functools

import jax
import jax.numpy as jnp
import numpy as np
from jax.experimental import pallas as pl
from jax.experimental.pallas import tpu as pltpu


def _sum_over_t_kernel(x_ref, o_ref, *, t_rem):
    """Accumulate the sum over the T (sublane) axis of each block into o_ref."""
    kt = pl.program_id(1)  # innermost, "arbitrary" reduction axis

    @pl.when(kt == 0)
    def _():
        o_ref[...] = jnp.zeros_like(o_ref)

    x = x_ref[...].astype(jnp.float32)  # (b_tile, t_tile, d_lane)
    if t_rem:
        # The last T tile hangs past the end of the array; its out-of-bounds
        # sublanes have unspecified contents, so zero them (VALU work is free
        # in this DMA-bound regime) instead of padding x in HBM.
        n_valid = jnp.where(kt == pl.num_programs(1) - 1, t_rem, x.shape[1])
        rows = jax.lax.broadcasted_iota(jnp.int32, x.shape, dimension=1)
        x = jnp.where(rows < n_valid, x, 0.0)

    o_ref[...] += jnp.sum(x, axis=1)


def attention_forward(x, att_W, att_V, op="attsum", mask=None):
    """Pallas implementation of Attention.forward (activation='tanh').

    att_W / att_V are accepted for API parity but are dead parameters: the
    softmax over the trailing size-1 axis makes the attention weights 1.0.
    """
    assert op in ("attsum", "attmean")
    del att_W, att_V  # dead compute (see math note above)

    B, T, D = x.shape

    # ---- lane layout: never pad in HBM -------------------------------------
    # If D divides 128 (and T*D is a multiple of 128), fold the contiguous
    # trailing (T, D) dims into lane-dense rows of 128 (free reshape).
    fold = 1
    if D % 128 != 0 and 128 % D == 0 and (T * D) % 128 == 0:
        fold = 128 // D
    if fold > 1:
        d_lane = 128
        t_eff = (T * D) // 128
        x_k = x.reshape(B, t_eff, d_lane)
    else:
        d_lane = D  # full-extent lane block dim: exempt from the 128 rule
        t_eff = T
        x_k = x

    # ---- batch ("parallel") tiling ------------------------------------------
    # Output-block sublane dim must be a multiple of 8 or the full batch.
    acc_budget = 256 * 1024  # cap on the VMEM-resident accumulator block
    b_cap = max(8, ((acc_budget // (d_lane * 4)) // 8) * 8)
    if B >= 16:
        # Give the parallel axis >= 2 programs so both v7x TensorCores stream.
        b_cap = min(b_cap, max(8, (pl.cdiv(B, 2) // 8) * 8))
    b_tile = B if B <= b_cap else b_cap
    nb = pl.cdiv(B, b_tile)

    # ---- T ("arbitrary") tiling: ~8 MiB streamed blocks ---------------------
    block_budget = 8 * 1024 * 1024
    t_cap = max(1, block_budget // (b_tile * d_lane * 4))
    if t_cap >= t_eff:
        t_tile = t_eff  # full extent: exempt from the sublane-8 rule
    else:
        t_tile = max(8, (t_cap // 8) * 8)
    nt = pl.cdiv(t_eff, t_tile)
    t_rem = t_eff % t_tile  # masked in-kernel on the last T step if nonzero

    s = pl.pallas_call(
        functools.partial(_sum_over_t_kernel, t_rem=t_rem),
        out_shape=jax.ShapeDtypeStruct((B, d_lane), jnp.float32),
        grid=(nb, nt),
        in_specs=[pl.BlockSpec((b_tile, t_tile, d_lane),
                               lambda ib, kt: (ib, kt, 0))],
        out_specs=pl.BlockSpec((b_tile, d_lane), lambda ib, kt: (ib, 0)),
        compiler_params=pltpu.CompilerParams(
            dimension_semantics=("parallel", "arbitrary"),
            vmem_limit_bytes=28 * 1024 * 1024),
    )(x_k)

    if fold > 1:
        # Undo the lane folding: lane c of the folded sum is the partial sum
        # over sequence positions t with t % fold == c // D.  Tiny XLA op.
        s = s.reshape(B, fold, D).sum(axis=1)

    s = s.astype(x.dtype)

    if op == "attmean":
        # Matches the PyTorch module: divide by mask.squeeze(1).sum(1)
        # (no guard for all-zero mask rows, same as the reference).
        assert mask is not None, "op='attmean' requires a mask"
        lengths = jnp.sum(mask.reshape(B, -1).astype(s.dtype), axis=1)
        s = s / lengths[:, None]
    return s


if __name__ == "__main__":
    B, T, D = 2, 8, 32
    init_stdev = 0.01

    key = jax.random.PRNGKey(0)
    kx, kw, kv = jax.random.split(key, 3)
    x = jax.random.normal(kx, (B, T, D), dtype=jnp.float32)
    # Deterministic parameter init mirroring: randn(...) * init_stdev
    att_W = jax.random.normal(kw, (D, D), dtype=jnp.float32) * init_stdev
    att_V = jax.random.normal(kv, (D, 1), dtype=jnp.float32) * init_stdev

    out = jax.block_until_ready(attention_forward(x, att_W, att_V))

    # Pure-JAX reference of the FULL PyTorch forward (tanh / att_W / att_V /
    # softmax over dim=2 included) proving the reduced kernel is exact.
    y = jnp.tanh(jnp.einsum("btd,de->bte", x, att_W))
    logits = jnp.einsum("bte,ek->btk", y, att_V)          # (B, T, 1)
    wts = jax.nn.softmax(logits, axis=2)                  # softmax over size-1 axis
    ref = jnp.sum(x * wts, axis=1)                        # (B, D)

    np.testing.assert_allclose(np.asarray(out), np.asarray(ref),
                               rtol=1e-5, atol=1e-5)

    # op='attmean' path (mask shaped (B, 1, T) as at the PyTorch call site).
    mask = jnp.ones((B, 1, T), dtype=jnp.float32)
    out_mean = jax.block_until_ready(
        attention_forward(x, att_W, att_V, op="attmean", mask=mask))
    np.testing.assert_allclose(np.asarray(out_mean), np.asarray(ref) / T,
                               rtol=1e-5, atol=1e-5)

    print("KERNEL_OK")
</pallas_src>

<mosaic_0001>
module attributes {stable_mosaic.version = 11 : i64} {
  func.func @_sum_over_t_kernel(%arg0: i32, %arg1: i32, %arg2: memref<2x2x128xf32, #tpu.memory_space<vmem>>, %arg3: memref<2x128xf32, #tpu.memory_space<vmem>>) attributes {dimension_semantics = [#tpu.dimension_semantics<parallel>, #tpu.dimension_semantics<arbitrary>], iteration_bounds = array<i64: 1, 1>, scalar_prefetch = 0 : i64, scratch_operands = 0 : i64, tpu.core_type = #tpu.core_type<tc>, window_params = [{transform_indices = @transform_0, window_bounds = array<i64: 2, 2, 128>}, {transform_indices = @transform_1, window_bounds = array<i64: 2, 128>}]} {
    %c0_i32 = arith.constant 0 : i32
    %0 = arith.cmpi eq, %arg1, %c0_i32 : i32
    %1 = arith.extui %0 : i1 to i32
    %c0_i32_0 = arith.constant 0 : i32
    %2 = arith.cmpi ne, %1, %c0_i32_0 : i32
    scf.if %2 {
      %cst_7 = arith.constant 0.000000e+00 : f32
      %8 = vector.broadcast %cst_7 : f32 to vector<2x128xf32>
      %c0_8 = arith.constant 0 : index
      %c0_9 = arith.constant 0 : index
      %9 = vector.load %arg3[%c0_8, %c0_9] : memref<2x128xf32, #tpu.memory_space<vmem>>, vector<2x128xf32>
      tpu.vector_store %arg3[%c0_8, %c0_9], %8 {strides = array<i32>} : memref<2x128xf32, #tpu.memory_space<vmem>>, vector<2x128xf32>,
    } else {
    }
    %c0 = arith.constant 0 : index
    %c0_1 = arith.constant 0 : index
    %c0_2 = arith.constant 0 : index
    %3 = vector.load %arg2[%c0, %c0_1, %c0_2] : memref<2x2x128xf32, #tpu.memory_space<vmem>>, vector<2x2x128xf32>
    %c0_3 = arith.constant 0 : index
    %c0_4 = arith.constant 0 : index
    %4 = vector.load %arg3[%c0_3, %c0_4] : memref<2x128xf32, #tpu.memory_space<vmem>>, vector<2x128xf32>
    %cst = arith.constant dense<0.000000e+00> : vector<2x128xf32>
    %5 = vector.multi_reduction <add>, %3, %cst [1] : vector<2x2x128xf32> to vector<2x128xf32>
    %6 = arith.addf %4, %5 : vector<2x128xf32>
    %c0_5 = arith.constant 0 : index
    %c0_6 = arith.constant 0 : index
    %7 = vector.load %arg3[%c0_5, %c0_6] : memref<2x128xf32, #tpu.memory_space<vmem>>, vector<2x128xf32>
    tpu.vector_store %arg3[%c0_5, %c0_6], %6 {strides = array<i32>} : memref<2x128xf32, #tpu.memory_space<vmem>>, vector<2x128xf32>,
    return
  }
  func.func @transform_0(%arg0: i32, %arg1: i32) -> (i32, i32, i32) {
    %c0_i32 = arith.constant 0 : i32
    %c0_i32_0 = arith.constant 0 : i32
    return %arg0, %arg1, %c0_i32 : i32, i32, i32
  }
  func.func @transform_1(%arg0: i32, %arg1: i32) -> (i32, i32) {
    %c0_i32 = arith.constant 0 : i32
    %c0_i32_0 = arith.constant 0 : i32
    return %arg0, %c0_i32 : i32, i32
  }
}

</mosaic_0001>

<bundles_post_ra>
// kernel: tpu_custom_call.1
= control target key start
LH: loop header
LB: loop body
LE: loop exit
PB: predicated region body
PF: predicated region fallthrough
CT: control target
= control target key end

     0   :  { %6 = vsyncpa [#allocation3], 0  ;;  %s138_s0 = inlined_call_operand.hbm [shape: f32[2,2,128], index: 0, kind: input, shape index: {}]   ;;  %s139_s1 = inlined_call_operand.hbm [shape: f32[2,128], index: 1, kind: output, shape index: {}]  }
   0x1   :  { %7 = vsyncpa [#allocation4], 0  ;;  %s117_s6 = smov [#allocation2]  }
   0x2   :  { %s13_s7 = sshll.u32 %s117_s6, 4  ;;  %s14_s7 = int_to_ptr.vmem [resolvable:$true] %s13_s7 }
   0x3   :  { %s81_s8 = scalar_lea.vmem %s14_s7, 64  ;;  %p86_p1 = scmp.lt.s32.totalorder %s14_s7, %s14_s7 }
   0x4   :  { %p82_p0 = scmp.ne.s32.totalorder %s14_s7, %s81_s8  ;;  %p87_p2 = scmp.lt.s32.totalorder %s81_s8, %s81_s8 }
   0x6   :  { %p88_p3 = por %p87_p2, %p86_p1 }
   0x8   :  { %p89_p4 = pnand %p88_p3, %p82_p0 }
   0xa   :  { %92 = shalt.err (!%p89_p4)
}
   0xb   :  { %s118_s9 = smov 32   ;;  %s119_s10 = smov 2  }
   0xc   :  { %19 = dma.hbm_to_vmem [thread:$0]  %s138_s0, 64, %s14_s7, [#allocation3], %s118_s9, %s118_s9, %s119_s10  }
   0xd   :  { %113 = dma.done.wait [#allocation3], 64  }
   0xe   :  { %114 = vsyncadd [#allocation3], 4294967232  ;;  %v120_v0 = vmov 0.0   ;;  %vm31_vm0 = vcmask 1041408   ;;  %v28_v1 = vld [vmem:[#allocation2] sm:$0x3] }
   0xf   :  { %27 = vst [vmem:[#allocation5] sm:$0x3] %v120_v0  ;;  %v29_v2 = vld [vmem:[#allocation2 + $0x2] sm:$0x3]  ;;  %v32_v3 = vsel %vm31_vm0, %v28_v1, 0.0  ;;  %vm48_vm1 = vcmask 1041409  }
  0x10   :  { %v39_v4 = vsel %vm31_vm0, %v29_v2, 0.0  ;;  %v33_v5 = vrot.slane %v32_v3, 4  ;;  %s121_s0 = smov [#allocation5]  }
  0x11   :  { %v40_v6 = vrot.slane %v39_v4, 4  ;;  %s59_s13 = sshll.u32 %s121_s0, 4  ;;  %s60_s13 = int_to_ptr.vmem [resolvable:$true] %s59_s13 }
  0x12   :  { %v34_v7 = vadd.f32 %v33_v5, %v32_v3  ;;  %s93_s14 = scalar_lea.vmem %s60_s13, 32  ;;  %p98_p6 = scmp.lt.s32.totalorder %s60_s13, %s60_s13 }
  0x13   :  { %v41_v8 = vadd.f32 %v40_v6, %v39_v4  ;;  %p94_p5 = scmp.ne.s32.totalorder %s60_s13, %s93_s14  ;;  %p99_p7 = scmp.lt.s32.totalorder %s93_s14, %s93_s14 }
  0x14   :  { %v35_v9 = vrot.slane %v34_v7, 2 }
  0x15   :  { %v42_v10 = vrot.slane %v41_v8, 2  ;;  %p100_p8 = por %p99_p7, %p98_p6 }
  0x16   :  { %v36_v11 = vadd.f32 %v35_v9, %v34_v7  ;;  %v30_v15 = vld [vmem:[#allocation5] sm:$0x3] }
  0x17   :  { %v43_v12 = vadd.f32 %v42_v10, %v41_v8  ;;  %p101_p9 = pnand %p100_p8, %p94_p5 }
  0x18   :  { %v37_v13 = vrot.slane %v36_v11, 1 }
  0x19   :  { %v44_v14 = vrot.slane %v43_v12, 1 }
  0x1a   :  { %v38_v16 = vadd.f32 %v37_v13, %v36_v11 }
  0x1b   :  { %v45_v17 = vadd.f32 %v44_v14, %v43_v12 }
  0x1d   :  { %v49_v18 = vsel %vm48_vm1, %v45_v17, %v38_v16 }
  0x1e   :  { %v51_v19 = vadd.f32 %v49_v18, %v30_v15 }
  0x20   :  { %52 = vst [vmem:[#allocation5] sm:$0x3] %v51_v19 }
  0x21   :  { %104 = shalt.err (!%p101_p9)
}
  0x22   :  { %62 = dma.vmem_to_hbm [thread:$0]  %s60_s13, 32, %s139_s1, [#allocation4]  }
  0x23   :  { %115 = dma.done.wait [#allocation4], 32  }
  0x24   :  { %116 = vsyncadd [#allocation4], 4294967264 }
  0x25   :  { %66 = vsyncpa [#allocation3], 1 }
  0x26   :  { %67 = vsyncpa [#allocation4], 1 }

</bundles_post_ra>
